<compile_context>
chip_gen: v5e
topology: v5e:2x2
jax: 0.10.0
libtpu: 0.0.40
codegen_flags: <defaults>
</compile_context>

<pallas_src>
import jax
import jax.numpy as jnp
import numpy as np
from jax.experimental import pallas as pl
from jax.experimental.pallas import tpu as pltpu

_MiB = 1024 * 1024
_SQRT_2_OVER_PI = 0.7978845608028654


# ------------------------- small helpers -------------------------

def _round_up(x, m):
    return (x + m - 1) // m * m


def _sublane(dtype):
    # Sublane packing of the second-minor dim: f32 -> 8, bf16 -> 16, int8 -> 32.
    return max(8, 32 // jnp.dtype(dtype).itemsize)


def _divisor_tile(dim, target, align):
    """Largest t <= target with t % align == 0 and dim % t == 0, else None."""
    t = (target // align) * align
    while t >= align:
        if dim % t == 0:
            return t
        t -= align
    return None


def _choose_tile(dim, target, aligns):
    """Return (tile, padded_dim). Prefer an exact divisor near `target`;
    otherwise pad `dim` up to a multiple of `target` (zero padding is exact)."""
    if dim <= target:
        return dim, dim  # full-extent block: always legal
    for align in aligns:
        t = _divisor_tile(dim, target, align)
        if t is not None and t >= target // 2:
            return t, dim
    return target, _round_up(dim, target)


def _pad2(a, rows, cols):
    pr, pc = rows - a.shape[0], cols - a.shape[1]
    if pr == 0 and pc == 0:
        return a
    return jnp.pad(a, ((0, pr), (0, pc)))


def _vmem_limit(bytes_needed):
    # Raise the scoped-VMEM limit above the per-generation defaults (16/32 MiB)
    # when needed, but stay well under v7x's 64 MiB physical VMEM.
    return int(min(48 * _MiB, max(32 * _MiB, 2 * bytes_needed)))


def _gelu_tanh(x):
    # gelu(x, approximate='tanh') = 0.5*x*(1 + tanh(sqrt(2/pi)*(x + 0.044715*x^3)))
    return 0.5 * x * (1.0 + jnp.tanh(_SQRT_2_OVER_PI * (x + 0.044715 * (x * x * x))))


# ------------------------- fused gate/up + tanh-GELU kernel -------------------------

def _gate_up_kernel(x_ref, wg_ref, wu_ref, o_ref, acc_g, acc_u):
    @pl.when(pl.program_id(2) == 0)
    def _():
        acc_g[...] = jnp.zeros_like(acc_g)
        acc_u[...] = jnp.zeros_like(acc_u)

    x = x_ref[...]  # shared activation tile, stays in the MXU input dtype (bf16)
    acc_g[...] += jnp.dot(x, wg_ref[...], preferred_element_type=jnp.float32)
    acc_u[...] += jnp.dot(x, wu_ref[...], preferred_element_type=jnp.float32)

    @pl.when(pl.program_id(2) == pl.num_programs(2) - 1)
    def _():
        o_ref[...] = (_gelu_tanh(acc_g[...]) * acc_u[...]).astype(o_ref.dtype)


def gate_up_pallas(x2d, w_gate, w_up, *, out_dtype=None,
                   tm_t=512, tn_t=512, tk_t=512):
    """x2d: (M, K); w_gate, w_up: pre-transposed (K, N).
    Returns gelu_tanh(x2d @ w_gate) * (x2d @ w_up) -> (M, N)."""
    M, K = x2d.shape
    Kg, N = w_gate.shape
    assert Kg == K and w_up.shape == (K, N)
    out_dtype = out_dtype if out_dtype is not None else x2d.dtype
    isz = jnp.dtype(x2d.dtype).itemsize
    osz = jnp.dtype(out_dtype).itemsize

    tm, Mp = _choose_tile(M, tm_t, (_sublane(x2d.dtype),))
    tn, Np = _choose_tile(N, tn_t, (256, 128))   # prefer 256 cols (v6e/v7x MXU)
    tk, Kp = _choose_tile(K, tk_t, (256, 128))

    # v7x megacore: keep at least one parallel grid axis with >= 2 tiles.
    if Mp // tm == 1 and Np // tn == 1 and Np % 256 == 0:
        tn = Np // 2

    x_p = _pad2(x2d, Mp, Kp)
    wg_p = _pad2(w_gate, Kp, Np)
    wu_p = _pad2(w_up, Kp, Np)

    grid = (Mp // tm, Np // tn, Kp // tk)

    vmem_need = (2 * (tm * tk + 2 * tk * tn) * isz   # double-buffered inputs
                 + 2 * tm * tn * osz                 # double-buffered output
                 + 2 * tm * tn * 4)                  # two f32 accumulators
    cost = pl.CostEstimate(
        flops=2 * 2 * Mp * Np * Kp,                  # two matmuls
        transcendentals=Mp * Np,                     # one tanh per output elem
        bytes_accessed=(Mp * Kp + 2 * Kp * Np) * isz + Mp * Np * osz,
    )

    out = pl.pallas_call(
        _gate_up_kernel,
        out_shape=jax.ShapeDtypeStruct((Mp, Np), out_dtype),
        grid_spec=pltpu.PrefetchScalarGridSpec(
            num_scalar_prefetch=0,
            grid=grid,
            in_specs=[
                pl.BlockSpec((tm, tk), lambda i, j, k: (i, k)),
                pl.BlockSpec((tk, tn), lambda i, j, k: (k, j)),
                pl.BlockSpec((tk, tn), lambda i, j, k: (k, j)),
            ],
            out_specs=pl.BlockSpec((tm, tn), lambda i, j, k: (i, j)),
            scratch_shapes=[
                pltpu.VMEM((tm, tn), jnp.float32),
                pltpu.VMEM((tm, tn), jnp.float32),
            ],
        ),
        compiler_params=pltpu.CompilerParams(
            dimension_semantics=("parallel", "parallel", "arbitrary"),
            vmem_limit_bytes=_vmem_limit(vmem_need),
        ),
        cost_estimate=cost,
    )(x_p, wg_p, wu_p)

    if (Mp, Np) != (M, N):
        out = out[:M, :N]
    return out


# ------------------------- tiled matmul kernel (down_proj) -------------------------

def _matmul_kernel(x_ref, w_ref, o_ref, acc_ref):
    @pl.when(pl.program_id(2) == 0)
    def _():
        acc_ref[...] = jnp.zeros_like(acc_ref)

    acc_ref[...] += jnp.dot(x_ref[...], w_ref[...],
                            preferred_element_type=jnp.float32)

    @pl.when(pl.program_id(2) == pl.num_programs(2) - 1)
    def _():
        o_ref[...] = acc_ref[...].astype(o_ref.dtype)


def matmul_pallas(x2d, w_t, *, out_dtype=None, tm_t=512, tn_t=512, tk_t=512):
    """x2d: (M, K); w_t: pre-transposed (K, N). Returns x2d @ w_t -> (M, N)."""
    M, K = x2d.shape
    Kw, N = w_t.shape
    assert Kw == K
    out_dtype = out_dtype if out_dtype is not None else x2d.dtype
    isz = jnp.dtype(x2d.dtype).itemsize
    osz = jnp.dtype(out_dtype).itemsize

    tm, Mp = _choose_tile(M, tm_t, (_sublane(x2d.dtype),))
    tn, Np = _choose_tile(N, tn_t, (256, 128))
    tk, Kp = _choose_tile(K, tk_t, (256, 128))

    if Mp // tm == 1 and Np // tn == 1 and Np % 256 == 0:
        tn = Np // 2

    x_p = _pad2(x2d, Mp, Kp)
    w_p = _pad2(w_t, Kp, Np)

    grid = (Mp // tm, Np // tn, Kp // tk)

    vmem_need = (2 * (tm * tk + tk * tn) * isz
                 + 2 * tm * tn * osz
                 + tm * tn * 4)
    cost = pl.CostEstimate(
        flops=2 * Mp * Np * Kp,
        transcendentals=0,
        bytes_accessed=(Mp * Kp + Kp * Np) * isz + Mp * Np * osz,
    )

    out = pl.pallas_call(
        _matmul_kernel,
        out_shape=jax.ShapeDtypeStruct((Mp, Np), out_dtype),
        grid_spec=pltpu.PrefetchScalarGridSpec(
            num_scalar_prefetch=0,
            grid=grid,
            in_specs=[
                pl.BlockSpec((tm, tk), lambda i, j, k: (i, k)),
                pl.BlockSpec((tk, tn), lambda i, j, k: (k, j)),
            ],
            out_specs=pl.BlockSpec((tm, tn), lambda i, j, k: (i, j)),
            scratch_shapes=[pltpu.VMEM((tm, tn), jnp.float32)],
        ),
        compiler_params=pltpu.CompilerParams(
            dimension_semantics=("parallel", "parallel", "arbitrary"),
            vmem_limit_bytes=_vmem_limit(vmem_need),
        ),
        cost_estimate=cost,
    )(x_p, w_p)

    if (Mp, Np) != (M, N):
        out = out[:M, :N]
    return out


# ------------------------- GemmaMLP forward (glue) -------------------------

def gemma_mlp_forward(params, x):
    """x: (B, S, hidden). params hold pre-transposed (in, out) weights.
    Runs the MXU in x.dtype (bf16 in production), accumulates in f32."""
    B, S, H = x.shape
    x2d = x.reshape(B * S, H)
    inter = gate_up_pallas(x2d, params["w_gate"], params["w_up"],
                           out_dtype=x.dtype)                    # (B*S, I)
    out2d = matmul_pallas(inter, params["w_down"], out_dtype=x.dtype)  # (B*S, H)
    return out2d.reshape(B, S, H)


# ------------------------- pure-JAX reference (validation) -------------------------

def reference_forward(params, x):
    g = x @ params["w_gate"]
    u = x @ params["w_up"]
    act = jax.nn.gelu(g, approximate=True)  # tanh approximation, matches PyTorch
    return (act * u) @ params["w_down"]


# ------------------------- main -------------------------

if __name__ == "__main__":
    # Small config consistent with GemmaMLP
    B, S = 2, 8
    hidden_size = 32
    intermediate_size = 64

    key = jax.random.PRNGKey(0)
    k_x, k_g, k_u, k_d = jax.random.split(key, 4)

    # PyTorch nn.Linear weights are (out_features, in_features); store them
    # pre-transposed as (in, out) ONCE so the hot path never transposes.
    w_gate_pt = jax.random.normal(k_g, (intermediate_size, hidden_size), jnp.float32) * 0.02
    w_up_pt   = jax.random.normal(k_u, (intermediate_size, hidden_size), jnp.float32) * 0.02
    w_down_pt = jax.random.normal(k_d, (hidden_size, intermediate_size), jnp.float32) * 0.02

    params_f32 = {
        "w_gate": jnp.asarray(w_gate_pt.T),   # (hidden, intermediate)
        "w_up":   jnp.asarray(w_up_pt.T),     # (hidden, intermediate)
        "w_down": jnp.asarray(w_down_pt.T),   # (intermediate, hidden)
    }
    x_f32 = jax.random.normal(k_x, (B, S, hidden_size), jnp.float32)

    fwd = jax.jit(gemma_mlp_forward)

    # --- f32 correctness check (tight tolerance) ---
    out_f32 = jax.block_until_ready(fwd(params_f32, x_f32))
    ref_f32 = reference_forward(params_f32, x_f32)
    np.testing.assert_allclose(np.asarray(out_f32), np.asarray(ref_f32),
                               rtol=1e-5, atol=2e-5)

    # --- bf16 production path (MXU operands bf16, accumulation f32) ---
    params_bf16 = {k: v.astype(jnp.bfloat16) for k, v in params_f32.items()}
    x_bf16 = x_f32.astype(jnp.bfloat16)
    out_bf16 = jax.block_until_ready(fwd(params_bf16, x_bf16))
    ref_bf16 = reference_forward(
        {k: v.astype(jnp.float32) for k, v in params_bf16.items()},
        x_bf16.astype(jnp.float32))
    np.testing.assert_allclose(np.asarray(out_bf16.astype(jnp.float32)),
                               np.asarray(ref_bf16), rtol=5e-2, atol=1e-3)

    print("KERNEL_OK")
</pallas_src>

<mosaic_0001>
module attributes {stable_mosaic.version = 11 : i64} {
  func.func @_matmul_kernel(%arg0: i32, %arg1: i32, %arg2: i32, %arg3: memref<16x64xf32, #tpu.memory_space<vmem>>, %arg4: memref<64x32xf32, #tpu.memory_space<vmem>>, %arg5: memref<16x32xf32, #tpu.memory_space<vmem>>, %arg6: memref<16x32xf32, #tpu.memory_space<vmem>>) attributes {dimension_semantics = [#tpu.dimension_semantics<parallel>, #tpu.dimension_semantics<parallel>, #tpu.dimension_semantics<arbitrary>], iteration_bounds = array<i64: 1, 1, 1>, scalar_prefetch = 0 : i64, scratch_operands = 1 : i64, tpu.core_type = #tpu.core_type<tc>, window_params = [{transform_indices = @transform_0, window_bounds = array<i64: 16, 64>}, {transform_indices = @transform_1, window_bounds = array<i64: 64, 32>}, {transform_indices = @transform_2, window_bounds = array<i64: 16, 32>}]} {
    %c0_i32 = arith.constant 0 : i32
    %0 = arith.cmpi eq, %arg2, %c0_i32 : i32
    %1 = arith.extui %0 : i1 to i32
    %c0_i32_0 = arith.constant 0 : i32
    %2 = arith.cmpi ne, %1, %c0_i32_0 : i32
    scf.if %2 {
      %cst_10 = arith.constant 0.000000e+00 : f32
      %12 = vector.broadcast %cst_10 : f32 to vector<16x32xf32>
      %c0_11 = arith.constant 0 : index
      %c0_12 = arith.constant 0 : index
      %13 = vector.load %arg6[%c0_11, %c0_12] : memref<16x32xf32, #tpu.memory_space<vmem>>, vector<16x32xf32>
      tpu.vector_store %arg6[%c0_11, %c0_12], %12 {strides = array<i32>} : memref<16x32xf32, #tpu.memory_space<vmem>>, vector<16x32xf32>,
    } else {
    }
    %c0 = arith.constant 0 : index
    %c0_1 = arith.constant 0 : index
    %3 = vector.load %arg6[%c0, %c0_1] : memref<16x32xf32, #tpu.memory_space<vmem>>, vector<16x32xf32>
    %c0_2 = arith.constant 0 : index
    %c0_3 = arith.constant 0 : index
    %4 = vector.load %arg3[%c0_2, %c0_3] : memref<16x64xf32, #tpu.memory_space<vmem>>, vector<16x64xf32>
    %c0_4 = arith.constant 0 : index
    %c0_5 = arith.constant 0 : index
    %5 = vector.load %arg4[%c0_4, %c0_5] : memref<64x32xf32, #tpu.memory_space<vmem>>, vector<64x32xf32>
    %cst = arith.constant dense<0.000000e+00> : vector<16x32xf32>
    %6 = tpu.matmul %4, %5, %cst {dimension_numbers = #tpu.dot_dimension_numbers<[1], [0], [0], [1], [0, 0, 1, 1], [], []>} : vector<16x64xf32>, vector<64x32xf32>, vector<16x32xf32> -> vector<16x32xf32>
    %7 = arith.addf %3, %6 : vector<16x32xf32>
    %c0_6 = arith.constant 0 : index
    %c0_7 = arith.constant 0 : index
    %8 = vector.load %arg6[%c0_6, %c0_7] : memref<16x32xf32, #tpu.memory_space<vmem>>, vector<16x32xf32>
    tpu.vector_store %arg6[%c0_6, %c0_7], %7 {strides = array<i32>} : memref<16x32xf32, #tpu.memory_space<vmem>>, vector<16x32xf32>,
    %c0_i32_8 = arith.constant 0 : i32
    %9 = arith.cmpi eq, %arg2, %c0_i32_8 : i32
    %10 = arith.extui %9 : i1 to i32
    %c0_i32_9 = arith.constant 0 : i32
    %11 = arith.cmpi ne, %10, %c0_i32_9 : i32
    scf.if %11 {
      %c0_10 = arith.constant 0 : index
      %c0_11 = arith.constant 0 : index
      %12 = vector.load %arg6[%c0_10, %c0_11] : memref<16x32xf32, #tpu.memory_space<vmem>>, vector<16x32xf32>
      %c0_12 = arith.constant 0 : index
      %c0_13 = arith.constant 0 : index
      %13 = vector.load %arg5[%c0_12, %c0_13] : memref<16x32xf32, #tpu.memory_space<vmem>>, vector<16x32xf32>
      tpu.vector_store %arg5[%c0_12, %c0_13], %12 {strides = array<i32>} : memref<16x32xf32, #tpu.memory_space<vmem>>, vector<16x32xf32>,
    } else {
    }
    return
  }
  func.func @transform_0(%arg0: i32, %arg1: i32, %arg2: i32) -> (i32, i32) {
    %c0_i32 = arith.constant 0 : i32
    return %arg0, %arg2 : i32, i32
  }
  func.func @transform_1(%arg0: i32, %arg1: i32, %arg2: i32) -> (i32, i32) {
    %c0_i32 = arith.constant 0 : i32
    return %arg2, %arg1 : i32, i32
  }
  func.func @transform_2(%arg0: i32, %arg1: i32, %arg2: i32) -> (i32, i32) {
    %c0_i32 = arith.constant 0 : i32
    return %arg0, %arg1 : i32, i32
  }
}

module attributes {stable_mosaic.version = 11 : i64} {
  func.func @_gate_up_kernel(%arg0: i32, %arg1: i32, %arg2: i32, %arg3: memref<16x32xf32, #tpu.memory_space<vmem>>, %arg4: memref<32x64xf32, #tpu.memory_space<vmem>>, %arg5: memref<32x64xf32, #tpu.memory_space<vmem>>, %arg6: memref<16x64xf32, #tpu.memory_space<vmem>>, %arg7: memref<16x64xf32, #tpu.memory_space<vmem>>, %arg8: memref<16x64xf32, #tpu.memory_space<vmem>>) attributes {dimension_semantics = [#tpu.dimension_semantics<parallel>, #tpu.dimension_semantics<parallel>, #tpu.dimension_semantics<arbitrary>], iteration_bounds = array<i64: 1, 1, 1>, scalar_prefetch = 0 : i64, scratch_operands = 2 : i64, tpu.core_type = #tpu.core_type<tc>, window_params = [{transform_indices = @transform_0, window_bounds = array<i64: 16, 32>}, {transform_indices = @transform_1, window_bounds = array<i64: 32, 64>}, {transform_indices = @transform_2, window_bounds = array<i64: 32, 64>}, {transform_indices = @transform_3, window_bounds = array<i64: 16, 64>}]} {
    %c0_i32 = arith.constant 0 : i32
    %0 = arith.cmpi eq, %arg2, %c0_i32 : i32
    %1 = arith.extui %0 : i1 to i32
    %c0_i32_0 = arith.constant 0 : i32
    %2 = arith.cmpi ne, %1, %c0_i32_0 : i32
    scf.if %2 {
      %cst_17 = arith.constant 0.000000e+00 : f32
      %17 = vector.broadcast %cst_17 : f32 to vector<16x64xf32>
      %c0_18 = arith.constant 0 : index
      %c0_19 = arith.constant 0 : index
      %18 = vector.load %arg7[%c0_18, %c0_19] : memref<16x64xf32, #tpu.memory_space<vmem>>, vector<16x64xf32>
      tpu.vector_store %arg7[%c0_18, %c0_19], %17 {strides = array<i32>} : memref<16x64xf32, #tpu.memory_space<vmem>>, vector<16x64xf32>,
      %cst_20 = arith.constant 0.000000e+00 : f32
      %19 = vector.broadcast %cst_20 : f32 to vector<16x64xf32>
      %c0_21 = arith.constant 0 : index
      %c0_22 = arith.constant 0 : index
      %20 = vector.load %arg8[%c0_21, %c0_22] : memref<16x64xf32, #tpu.memory_space<vmem>>, vector<16x64xf32>
      tpu.vector_store %arg8[%c0_21, %c0_22], %19 {strides = array<i32>} : memref<16x64xf32, #tpu.memory_space<vmem>>, vector<16x64xf32>,
    } else {
    }
    %c0 = arith.constant 0 : index
    %c0_1 = arith.constant 0 : index
    %3 = vector.load %arg3[%c0, %c0_1] : memref<16x32xf32, #tpu.memory_space<vmem>>, vector<16x32xf32>
    %c0_2 = arith.constant 0 : index
    %c0_3 = arith.constant 0 : index
    %4 = vector.load %arg7[%c0_2, %c0_3] : memref<16x64xf32, #tpu.memory_space<vmem>>, vector<16x64xf32>
    %c0_4 = arith.constant 0 : index
    %c0_5 = arith.constant 0 : index
    %5 = vector.load %arg4[%c0_4, %c0_5] : memref<32x64xf32, #tpu.memory_space<vmem>>, vector<32x64xf32>
    %cst = arith.constant dense<0.000000e+00> : vector<16x64xf32>
    %6 = tpu.matmul %3, %5, %cst {dimension_numbers = #tpu.dot_dimension_numbers<[1], [0], [0], [1], [0, 0, 1, 1], [], []>} : vector<16x32xf32>, vector<32x64xf32>, vector<16x64xf32> -> vector<16x64xf32>
    %7 = arith.addf %4, %6 : vector<16x64xf32>
    %c0_6 = arith.constant 0 : index
    %c0_7 = arith.constant 0 : index
    %8 = vector.load %arg7[%c0_6, %c0_7] : memref<16x64xf32, #tpu.memory_space<vmem>>, vector<16x64xf32>
    tpu.vector_store %arg7[%c0_6, %c0_7], %7 {strides = array<i32>} : memref<16x64xf32, #tpu.memory_space<vmem>>, vector<16x64xf32>,
    %c0_8 = arith.constant 0 : index
    %c0_9 = arith.constant 0 : index
    %9 = vector.load %arg8[%c0_8, %c0_9] : memref<16x64xf32, #tpu.memory_space<vmem>>, vector<16x64xf32>
    %c0_10 = arith.constant 0 : index
    %c0_11 = arith.constant 0 : index
    %10 = vector.load %arg5[%c0_10, %c0_11] : memref<32x64xf32, #tpu.memory_space<vmem>>, vector<32x64xf32>
    %cst_12 = arith.constant dense<0.000000e+00> : vector<16x64xf32>
    %11 = tpu.matmul %3, %10, %cst_12 {dimension_numbers = #tpu.dot_dimension_numbers<[1], [0], [0], [1], [0, 0, 1, 1], [], []>} : vector<16x32xf32>, vector<32x64xf32>, vector<16x64xf32> -> vector<16x64xf32>
    %12 = arith.addf %9, %11 : vector<16x64xf32>
    %c0_13 = arith.constant 0 : index
    %c0_14 = arith.constant 0 : index
    %13 = vector.load %arg8[%c0_13, %c0_14] : memref<16x64xf32, #tpu.memory_space<vmem>>, vector<16x64xf32>
    tpu.vector_store %arg8[%c0_13, %c0_14], %12 {strides = array<i32>} : memref<16x64xf32, #tpu.memory_space<vmem>>, vector<16x64xf32>,
    %c0_i32_15 = arith.constant 0 : i32
    %14 = arith.cmpi eq, %arg2, %c0_i32_15 : i32
    %15 = arith.extui %14 : i1 to i32
    %c0_i32_16 = arith.constant 0 : i32
    %16 = arith.cmpi ne, %15, %c0_i32_16 : i32
    scf.if %16 {
      %c0_17 = arith.constant 0 : index
      %c0_18 = arith.constant 0 : index
      %17 = vector.load %arg7[%c0_17, %c0_18] : memref<16x64xf32, #tpu.memory_space<vmem>>, vector<16x64xf32>
      %cst_19 = arith.constant 5.000000e-01 : f32
      %18 = vector.broadcast %cst_19 : f32 to vector<16x64xf32>
      %19 = arith.mulf %18, %17 : vector<16x64xf32>
      %20 = arith.mulf %17, %17 : vector<16x64xf32>
      %21 = arith.mulf %20, %17 : vector<16x64xf32>
      %cst_20 = arith.constant 4.471500e-02 : f32
      %22 = vector.broadcast %cst_20 : f32 to vector<16x64xf32>
      %23 = arith.mulf %22, %21 : vector<16x64xf32>
      %24 = arith.addf %17, %23 : vector<16x64xf32>
      %cst_21 = arith.constant 0.797884583 : f32
      %25 = vector.broadcast %cst_21 : f32 to vector<16x64xf32>
      %26 = arith.mulf %25, %24 : vector<16x64xf32>
      %27 = math.tanh %26 : vector<16x64xf32>
      %cst_22 = arith.constant 1.000000e+00 : f32
      %28 = vector.broadcast %cst_22 : f32 to vector<16x64xf32>
      %29 = arith.addf %28, %27 : vector<16x64xf32>
      %30 = arith.mulf %19, %29 : vector<16x64xf32>
      %c0_23 = arith.constant 0 : index
      %c0_24 = arith.constant 0 : index
      %31 = vector.load %arg8[%c0_23, %c0_24] : memref<16x64xf32, #tpu.memory_space<vmem>>, vector<16x64xf32>
      %32 = arith.mulf %30, %31 : vector<16x64xf32>
      %c0_25 = arith.constant 0 : index
      %c0_26 = arith.constant 0 : index
      %33 = vector.load %arg6[%c0_25, %c0_26] : memref<16x64xf32, #tpu.memory_space<vmem>>, vector<16x64xf32>
      tpu.vector_store %arg6[%c0_25, %c0_26], %32 {strides = array<i32>} : memref<16x64xf32, #tpu.memory_space<vmem>>, vector<16x64xf32>,
    } else {
    }
    return
  }
  func.func @transform_0(%arg0: i32, %arg1: i32, %arg2: i32) -> (i32, i32) {
    %c0_i32 = arith.constant 0 : i32
    return %arg0, %arg2 : i32, i32
  }
  func.func @transform_1(%arg0: i32, %arg1: i32, %arg2: i32) -> (i32, i32) {
    %c0_i32 = arith.constant 0 : i32
    return %arg2, %arg1 : i32, i32
  }
  func.func @transform_2(%arg0: i32, %arg1: i32, %arg2: i32) -> (i32, i32) {
    %c0_i32 = arith.constant 0 : i32
    return %arg2, %arg1 : i32, i32
  }
  func.func @transform_3(%arg0: i32, %arg1: i32, %arg2: i32) -> (i32, i32) {
    %c0_i32 = arith.constant 0 : i32
    return %arg0, %arg1 : i32, i32
  }
}

</mosaic_0001>

<bundles_post_ra>
// kernel: gemma_mlp_forward.3
= control target key start
LH: loop header
LB: loop body
LE: loop exit
PB: predicated region body
PF: predicated region fallthrough
CT: control target
= control target key end

     0   :  { %vm16_vm0 = vcmask 261120   ;;  %v131_v2 = vmov 0.0   ;;  %s189_s0 = inlined_call_operand.vmem [shape: f32[16,64], index: 0, kind: input, shape index: {}]   ;;  %s190_s1 = inlined_call_operand.vmem [shape: f32[64,32], index: 1, kind: input, shape index: {}]   ;;  %s191_s2 = inlined_call_operand.hbm [shape: f32[16,32], index: 2, kind: output, shape index: {}]  }
   0x1   :  { %v30_v0 = vld [vmem:[%s190_s1 + $0x38] sm:$0xff]  ;;  %v29_v1 = vld [vmem:[%s190_s1 + $0x30] sm:$0xff]  ;;  %17 = vst.msk [vmem:[#allocation2] sm:$0xff] %vm16_vm0, %v131_v2  ;;  %v28_v3 = vld [vmem:[%s190_s1 + $0x28] sm:$0xff] }
   0x2   :  { %46 = vmatpush.msra.mxu0 %v30_v0  ;;  %93 = vmatpush.msra.mxu1 %v30_v0  ;;  %18 = vst.msk [vmem:[#allocation2 + $0x8] sm:$0xff] %vm16_vm0, %v131_v2 }
   0x4   :  { %47 = vmatpush.msra.mxu0 %v29_v1  ;;  %94 = vmatpush.msra.mxu1 %v29_v1 }
   0x5   :  { %7 = vsyncpa [#allocation4], 0  ;;  %v27_v4 = vld [vmem:[%s190_s1 + $0x20] sm:$0xff]  ;;  %v26_v5 = vld [vmem:[%s190_s1 + $0x18] sm:$0xff]  ;;  %vm31_vm1 = vcmask 523264   ;;  %s133_s4 = smov 128  }
   0x6   :  { %48 = vmatpush.msra.mxu0 %v28_v3  ;;  %95 = vmatpush.msra.mxu1 %v28_v3  ;;  %v25_v6 = vld [vmem:[%s190_s1 + $0x10] sm:$0xff]  ;;  %v24_v7 = vld [vmem:[%s190_s1 + $0x8] sm:$0xff]  ;;  %v23_v8 = vld [vmem:[%s190_s1] sm:$0xff]  ;;  %s132_s1 = smov [#allocation3]   ;;  %s134_s5 = smov 8  }
   0x7   :  { %v21_v9 = vld [vmem:[%s189_s0] sm:$0xff]  ;;  %v22_v10 = vld [vmem:[%s189_s0 + $0x8] sm:$0xff]  ;;  %s77_s29 = sshll.u32 %s132_s1, 4  ;;  %s79_s0 = sshll.u32 %s191_s2, 4  ;;  %s78_s29 = int_to_ptr.vmem [resolvable:$true] %s77_s29  ;;  %s80_s0 = int_to_ptr.hbm [resolvable:$true] %s79_s0 }
   0x8   :  { %49 = vmatpush.msra.mxu0 %v27_v4  ;;  %96 = vmatpush.msra.mxu1 %v27_v4  ;;  %v19_v11 = vld [vmem:[#allocation2] sm:$0xff] }
   0x9   :  { %v20_v12 = vld [vmem:[#allocation2 + $0x8] sm:$0xff] }
   0xa   :  { %50 = vmatpush.msra.mxu0 %v26_v5  ;;  %97 = vmatpush.msra.mxu1 %v26_v5 }
   0xc   :  { %51 = vmatpush.msra.mxu0 %v25_v6  ;;  %98 = vmatpush.msra.mxu1 %v25_v6 }
   0xe   :  { %52 = vmatpush.msra.mxu0 %v24_v7  ;;  %99 = vmatpush.msra.mxu1 %v24_v7 }
  0x10   :  { %53 = vmatpush.msra.mxu0 %v23_v8  ;;  %100 = vmatpush.msra.mxu1 %v23_v8 }
  0x11   :  { %91 = vmatmul.msk.f32.vlgmr.msra.gmra.mxu0 %vm31_vm1, %v21_v9  ;;  %92 = vmatmul.msk.f32.vlgmr.msra.gmra.mxu1 %vm31_vm1, %v22_v10 }
  0x8e   :  { %v55_v13 = vpop.f32.mrf.mxu0  ;;  %v58_v14 = vpop.f32.mrf.mxu1 }
  0x8f   :  { %v61_v15 = vadd.f32 %v55_v13, %v19_v11  ;;  %v62_v16 = vadd.f32 %v58_v14, %v20_v12 }
  0x91   :  { %64 = vst.msk [vmem:[#allocation2] sm:$0xff] %vm16_vm0, %v61_v15 }
  0x92   :  { %65 = vst.msk [vmem:[#allocation2 + $0x8] sm:$0xff] %vm16_vm0, %v62_v16 }
  0x98   :  { %v69_v17 = vld [vmem:[#allocation2] sm:$0xff] }
  0x99   :  { %v70_v18 = vld [vmem:[#allocation2 + $0x8] sm:$0xff]  ;;  %71 = vst.msk [vmem:[#allocation3] sm:$0xff] %vm16_vm0, %v69_v17 }
  0x9a   :  { %72 = vst.msk [vmem:[#allocation3 + $0x8] sm:$0xff] %vm16_vm0, %v70_v18 }
  0x9b   :  { %85 = dma.vmem_to_hbm [thread:$0]  %s78_s29, 256, %s80_s0, [#allocation4], %s133_s4, %s133_s4, %s134_s5  }
  0x9c   :  { %129 = dma.done.wait [#allocation4], 256  }
  0x9d   :  { %130 = vsyncadd [#allocation4], 4294967040 }
  0x9e   :  { %90 = vsyncpa [#allocation4], 1 }

// kernel: gemma_mlp_forward.2
= control target key start
LH: loop header
LB: loop body
LE: loop exit
PB: predicated region body
PF: predicated region fallthrough
CT: control target
= control target key end

     0   :  { %8 = vsyncpa [#allocation5], 0  ;;  %s330_s0 = inlined_call_operand.hbm [shape: f32[16,32], index: 0, kind: input, shape index: {}]   ;;  %s331_s1 = inlined_call_operand.hbm [shape: f32[32,64], index: 1, kind: input, shape index: {}]   ;;  %s332_s2 = inlined_call_operand.hbm [shape: f32[32,64], index: 2, kind: input, shape index: {}]   ;;  %s333_s3 = inlined_call_operand.vmem [shape: f32[16,64], index: 3, kind: output, shape index: {}]  }
   0x1   :  { %9 = vsyncpa [#allocation7], 0  ;;  %s27_s14 = sshll.u32 %s331_s1, 4  ;;  %s279_s15 = smov [#allocation6]   ;;  %s28_s14 = int_to_ptr.hbm [resolvable:$true] %s27_s14 }
   0x2   :  { %s29_s16 = sshll.u32 %s279_s15, 4  ;;  %s14_s19 = sshll.u32 %s330_s0, 4  ;;  %s30_s16 = int_to_ptr.vmem [resolvable:$true] %s29_s16  ;;  %s15_s19 = int_to_ptr.hbm [resolvable:$true] %s14_s19 }
   0x3   :  { %s280_s20 = smov 128   ;;  %s281_s21 = smov 8  }
   0x4   :  { %35 = dma.hbm_to_vmem [thread:$0]  %s28_s14, 512, %s30_s16, [#allocation7], %s280_s20, %s280_s20, %s281_s21  }
   0x5   :  { %s282_s22 = smov [#allocation4]   ;;  %s40_s26 = sshll.u32 %s332_s2, 4  ;;  %s41_s26 = int_to_ptr.hbm [resolvable:$true] %s40_s26 }
   0x6   :  { %s16_s23 = sshll.u32 %s282_s22, 4  ;;  %s283_s1 = smov [#allocation8]   ;;  %s17_s23 = int_to_ptr.vmem [resolvable:$true] %s16_s23 }
   0x7   :  { %22 = dma.hbm_to_vmem [thread:$0]  %s15_s19, 256, %s17_s23, [#allocation5], %s280_s20, %s280_s20, %s281_s21  }
   0x8   :  { %s42_s27 = sshll.u32 %s283_s1, 4  ;;  %s43_s27 = int_to_ptr.vmem [resolvable:$true] %s42_s27 }
   0x9   :  { %48 = dma.hbm_to_vmem [thread:$0]  %s41_s26, 512, %s43_s27, [#allocation7], %s280_s20, %s280_s20, %s281_s21  }
   0xa   :  { %275 = dma.done.wait [#allocation5], 256  }
   0xb   :  { %276 = vsyncadd [#allocation5], 4294967040 }
   0xc   :  { %277 = dma.done.wait [#allocation7], 1024  }
   0xd   :  { %278 = vsyncadd [#allocation7], 4294966272  ;;  %vm65_vm0 = vcmask 523264   ;;  %v284_v0 = vmov 0.0   ;;  %v77_v1 = vld [vmem:[#allocation6 + $0x18] sm:$0xff]  ;;  %v76_v2 = vld [vmem:[#allocation6 + $0x10] sm:$0xff] }
   0xe   :  { %66 = vst.msk [vmem:[#allocation2] sm:$0xff] %vm65_vm0, %v284_v0  ;;  %97 = vmatpush.msra.mxu0 %v77_v1  ;;  %185 = vmatpush.msra.mxu2 %v77_v1  ;;  %v75_v3 = vld [vmem:[#allocation6 + $0x8] sm:$0xff]  ;;  %v118_v4 = vld [vmem:[#allocation8 + $0x18] sm:$0xff]  ;;  %v117_v5 = vld [vmem:[#allocation8 + $0x10] sm:$0xff]  ;;  %vm78_vm1 = vcmask 261120  }
   0xf   :  { %67 = vst.msk [vmem:[#allocation2 + $0x8] sm:$0xff] %vm65_vm0, %v284_v0  ;;  %v74_v6 = vld [vmem:[#allocation6] sm:$0xff]  ;;  %131 = vmatpush.msra.mxu1 %v118_v4  ;;  %189 = vmatpush.msra.mxu3 %v118_v4  ;;  %v70_v7 = vld [vmem:[#allocation4] sm:$0xff]  ;;  %v71_v8 = vld [vmem:[#allocation4 + $0x8] sm:$0xff] }
  0x10   :  { %68 = vst.msk [vmem:[#allocation3] sm:$0xff] %vm65_vm0, %v284_v0  ;;  %98 = vmatpush.msra.mxu0 %v76_v2  ;;  %186 = vmatpush.msra.mxu2 %v76_v2  ;;  %v116_v9 = vld [vmem:[#allocation8 + $0x8] sm:$0xff]  ;;  %v115_v10 = vld [vmem:[#allocation8] sm:$0xff] }
  0x11   :  { %69 = vst.msk [vmem:[#allocation3 + $0x8] sm:$0xff] %vm65_vm0, %v284_v0  ;;  %132 = vmatpush.msra.mxu1 %v117_v5  ;;  %190 = vmatpush.msra.mxu3 %v117_v5 }
  0x12   :  { %99 = vmatpush.msra.mxu0 %v75_v3  ;;  %187 = vmatpush.msra.mxu2 %v75_v3 }
  0x13   :  { %133 = vmatpush.msra.mxu1 %v116_v9  ;;  %191 = vmatpush.msra.mxu3 %v116_v9 }
  0x14   :  { %100 = vmatpush.msra.mxu0 %v74_v6  ;;  %188 = vmatpush.msra.mxu2 %v74_v6 }
  0x15   :  { %181 = vmatmul.msk.f32.vlgmr.msra.gmra.mxu0 %vm78_vm1, %v70_v7  ;;  %182 = vmatmul.msk.f32.vlgmr.msra.gmra.mxu2 %vm78_vm1, %v71_v8  ;;  %v72_v11 = vld [vmem:[#allocation2] sm:$0xff] }
  0x16   :  { %134 = vmatpush.msra.mxu1 %v115_v10  ;;  %192 = vmatpush.msra.mxu3 %v115_v10  ;;  %v73_v15 = vld [vmem:[#allocation2 + $0x8] sm:$0xff] }
  0x17   :  { %183 = vmatmul.msk.f32.vlgmr.msra.gmra.mxu1 %vm78_vm1, %v70_v7  ;;  %184 = vmatmul.msk.f32.vlgmr.msra.gmra.mxu3 %vm78_vm1, %v71_v8  ;;  %v113_v14 = vld [vmem:[#allocation3] sm:$0xff] }
  0x18   :  { %v114_v20 = vld [vmem:[#allocation3 + $0x8] sm:$0xff] }
  0x92   :  { %v102_v12 = vpop.f32.mrf.mxu0 }
  0x93   :  { %v108_v13 = vadd.f32 %v102_v12, %v72_v11 }
  0x94   :  { %v136_v16 = vpop.f32.mrf.mxu1 }
  0x95   :  { %111 = vst.msk [vmem:[#allocation2] sm:$0xff] %vm65_vm0, %v108_v13  ;;  %v142_v17 = vadd.f32 %v136_v16, %v113_v14 }
  0x97   :  { %144 = vst.msk [vmem:[#allocation3] sm:$0xff] %vm65_vm0, %v142_v17 }
  0x98   :  { %v105_v18 = vpop.f32.mrf.mxu2 }
  0x99   :  { %v109_v19 = vadd.f32 %v105_v18, %v73_v15 }
  0x9a   :  { %v139_v22 = vpop.f32.mrf.mxu3 }
  0x9b   :  { %112 = vst.msk [vmem:[#allocation2 + $0x8] sm:$0xff] %vm65_vm0, %v109_v19  ;;  %v143_v24 = vadd.f32 %v139_v22, %v114_v20 }
  0x9c   :  { %v149_v21 = vld [vmem:[#allocation2] sm:$0xff] }
  0x9d   :  { %v153_v23 = vmul.f32 %v149_v21, %v149_v21  ;;  %145 = vst.msk [vmem:[#allocation3 + $0x8] sm:$0xff] %vm65_vm0, %v143_v24  ;;  %v151_v36 = vmul.f32 0.5, %v149_v21 }
  0x9e   :  { %v169_v38 = vld [vmem:[#allocation3] sm:$0xff] }
  0x9f   :  { %v155_v25 = vmul.f32 %v153_v23, %v149_v21 }
  0xa1   :  { %v157_v26 = vmul.f32 0.044715, %v155_v25 }
  0xa2   :  { %v150_v27 = vld [vmem:[#allocation2 + $0x8] sm:$0xff] }
  0xa3   :  { %v159_v28 = vadd.f32 %v157_v26, %v149_v21  ;;  %v154_v29 = vmul.f32 %v150_v27, %v150_v27  ;;  %v152_v42 = vmul.f32 0.5, %v150_v27 }
  0xa4   :  { %v170_v44 = vld [vmem:[#allocation3 + $0x8] sm:$0xff] }
  0xa5   :  { %v161_v30 = vmul.f32 0.7978846, %v159_v28  ;;  %v156_v31 = vmul.f32 %v154_v29, %v150_v27 }
  0xa7   :  { %199 = vtanh.f32 %v161_v30  ;;  %v158_v32 = vmul.f32 0.044715, %v156_v31 }
  0xa9   :  { %v160_v33 = vadd.f32 %v158_v32, %v150_v27 }
  0xab   :  { %v162_v34 = vmul.f32 0.7978846, %v160_v33 }
  0xad   :  { %v200_v35 = vpop.eup %199  ;;  %201 = vtanh.f32 %v162_v34 }
  0xae   :  { %v165_v37 = vadd.f32 1.0, %v200_v35 }
  0xb0   :  { %v167_v39 = vmul.f32 %v165_v37, %v151_v36 }
  0xb2   :  { %v171_v40 = vmul.f32 %v169_v38, %v167_v39 }
  0xb3   :  { %v202_v41 = vpop.eup %201 }
  0xb4   :  { %173 = vst.msk [vmem:[%s333_s3] sm:$0xff] %vm65_vm0, %v171_v40  ;;  %v166_v43 = vadd.f32 1.0, %v202_v41 }
  0xb6   :  { %v168_v45 = vmul.f32 %v166_v43, %v152_v42 }
  0xb8   :  { %v172_v46 = vmul.f32 %v170_v44, %v168_v45 }
  0xba   :  { %174 = vst.msk [vmem:[%s333_s3 + $0x8] sm:$0xff] %vm65_vm0, %v172_v46 }
  0xbb   :  { %179 = vsyncpa [#allocation5], 1 }
  0xbc   :  { %180 = vsyncpa [#allocation7], 1 }

</bundles_post_ra>
